<compile_context>
chip_gen: v7x
topology: tpu7x:2x2x1
jax: 0.10.0
libtpu: 0.0.40
codegen_flags: <defaults>
</compile_context>

<pallas_src>
import functools

import jax
import jax.numpy as jnp
from jax import lax
from jax.experimental import pallas as pl
from jax.experimental.pallas import tpu as pltpu

D_MODEL = 32
KERNEL_SIZE = 3
EXPANSION = 2
HIDDEN = D_MODEL * EXPANSION
LN_EPS = 1e-5
PACK = 128 // D_MODEL            # tokens packed per 128-lane row
LANES = PACK * D_MODEL           # 128


def _erf(z):
    # Abramowitz & Stegun 7.1.26, |error| <= 1.5e-7.  exp -> EUP slot, short
    # polynomial on the VPU (much lighter than XLA's erf polynomial).
    a = jnp.abs(z)
    t = 1.0 / (1.0 + 0.3275911 * a)
    poly = t * (0.254829592
                + t * (-0.284496736
                       + t * (1.421413741
                              + t * (-1.453152027 + t * 1.061405429))))
    e = 1.0 - poly * jnp.exp(-a * a)
    return jnp.where(z < 0.0, -e, e)


def _gelu(x, approx):
    if approx:
        return jax.nn.gelu(x, approximate=True)      # tanh -> EUP
    return 0.5 * x * (1.0 + _erf(x * 0.7071067811865476))  # exact (to 1.5e-7)


def conv1d_block_kernel(x_ref, vec_ref, w1_ref, w2_ref, mavg_ref, out_ref, *,
                        seq_len, rows_per_seq, approx_gelu):
    # Per-grid-step shapes (R4 packed rows = tb whole sequences, 4 tokens/row):
    #   x_ref   : (R4, 128)   activations, token j of a row in lanes [32j,32j+32)
    #   vec_ref : (8, 256)    rows 0..2 dw taps (lane-tiled), 3 dw bias,
    #                         4 b1' (LN-folded, 256 lanes), 5 b2 (128 lanes)
    #   w1_ref  : (128, 256)  block-diag of (LN-gamma-folded) w1
    #   w2_ref  : (256, 128)  block-diag of w2
    #   mavg_ref: (128, 128)  block-diag ones(32,32)/32 (segmented LN mean)
    #   out_ref : (R4, 128)
    R4, NL = x_ref.shape
    D = D_MODEL
    K = KERNEL_SIZE

    x = x_ref[...].astype(jnp.float32)        # read once; also the residual

    # ---- per-lane token position within its sequence (no HBM pos stream) ----
    # All-f32 arithmetic; exact because every quantity is an integer < 2^22 and
    # the divisions are correctly rounded (floor((n+0.5)/m) == n//m).
    row_i = lax.broadcasted_iota(jnp.int32, (R4, NL), 0)
    lane_i = lax.broadcasted_iota(jnp.int32, (R4, NL), 1)
    row = row_i.astype(jnp.float32)
    lane = lane_i.astype(jnp.float32)
    seq_row = jnp.floor((row + 0.5) / float(rows_per_seq))    # row // rows_per_seq
    tok_in_row = jnp.floor((lane + 0.5) / float(D))           # lane // D
    pos = (row - seq_row * float(rows_per_seq)) * float(PACK) + tok_in_row
    has_prev = pos >= 0.5                      # token t-1 exists in the sequence
    has_next = pos <= float(seq_len) - 1.5     # token t+1 exists in the sequence

    # ---- depthwise conv1d: taps at offsets (-1, 0, +1), 'same' padding -------
    w_m1 = vec_ref[0:1, 0:NL]
    w_c = vec_ref[1:2, 0:NL]
    w_p1 = vec_ref[2:3, 0:NL]
    dw_b = vec_ref[K:K + 1, 0:NL]

    acc = x * w_c + dw_b

    # token t+1: lane-roll left by D; the last packed token of each row takes
    # the first packed token of the next row (1-row sublane roll fix-up).
    nxt_lane = pltpu.roll(x, shift=NL - D, axis=1)
    nxt_row = pltpu.roll(nxt_lane, shift=R4 - 1, axis=0)
    x_next = jnp.where(lane_i >= NL - D, nxt_row, nxt_lane)
    acc = acc + jnp.where(has_next, x_next, 0.0) * w_p1

    # token t-1: lane-roll right by D; the first packed token of each row takes
    # the last packed token of the previous row.
    prv_lane = pltpu.roll(x, shift=D, axis=1)
    prv_row = pltpu.roll(prv_lane, shift=1, axis=0)
    x_prev = jnp.where(lane_i < D, prv_row, prv_lane)
    acc = acc + jnp.where(has_prev, x_prev, 0.0) * w_m1

    # ---- LayerNorm over each token's 32 lanes (segmented reduce on the MXU;
    #      gamma/beta are folded into w1'/b1' on the host) ----------------------
    mavg = mavg_ref[...]
    mean = jnp.dot(acc, mavg, preferred_element_type=jnp.float32)
    cent = acc - mean
    var = jnp.dot(cent * cent, mavg, preferred_element_type=jnp.float32)
    xn = cent * lax.rsqrt(var + LN_EPS)

    # ---- pointwise conv1 (D->H, 4 tokens at once via block-diag weights) -----
    h = jnp.dot(xn.astype(w1_ref.dtype), w1_ref[...],
                preferred_element_type=jnp.float32)
    h = h + vec_ref[K + 1:K + 2, :]
    h = _gelu(h, approx_gelu)

    # ---- pointwise conv2 (H->D) + residual ------------------------------------
    o = jnp.dot(h.astype(w2_ref.dtype), w2_ref[...],
                preferred_element_type=jnp.float32)
    o = o + vec_ref[K + 2:K + 3, 0:NL]
    out_ref[...] = (o + x).astype(out_ref.dtype)


def _pack_params(p, matmul_dtype=jnp.float32):
    """Fold LN gamma/beta into w1/b1 and pack everything lane-dense.

    Returns (vecs, W1p, W2p, Mavg):
      vecs : (8, PACK*H) f32  taps / biases (rows padded to 8)
      W1p  : (128, 256)       block-diag of gamma-folded w1
      W2p  : (256, 128)       block-diag of w2
      Mavg : (128, 128) f32   block-diag ones(D,D)/D for the segmented LN mean
    """
    D, H, P = D_MODEL, HIDDEN, PACK
    g = p["ln_g"].reshape(D)
    be = p["ln_b"].reshape(D)
    w1f = g[:, None] * p["w1"]                       # (D, H)  gamma folded
    b1f = be @ p["w1"] + p["b1"].reshape(-1)         # (H,)    beta folded

    eye_p = jnp.eye(P, dtype=jnp.float32)
    W1p = jnp.kron(eye_p, w1f).astype(matmul_dtype)             # (P*D, P*H)
    W2p = jnp.kron(eye_p, p["w2"]).astype(matmul_dtype)         # (P*H, P*D)
    Mavg = jnp.kron(eye_p, jnp.ones((D, D), jnp.float32) / D)   # (P*D, P*D)

    vecs = jnp.zeros((8, P * H), jnp.float32)
    for k in range(KERNEL_SIZE):
        vecs = vecs.at[k, 0:P * D].set(jnp.tile(p["dw_w"][k], P))
    vecs = vecs.at[KERNEL_SIZE, 0:P * D].set(jnp.tile(p["dw_b"].reshape(-1), P))
    vecs = vecs.at[KERNEL_SIZE + 1, :].set(jnp.tile(b1f, P))
    vecs = vecs.at[KERNEL_SIZE + 2, 0:P * D].set(jnp.tile(p["b2"].reshape(-1), P))
    return vecs, W1p, W2p, Mavg


def _pick_batch_tile(B, rows_per_seq, target_rows=1024, vmem_budget=24 << 20):
    """How many whole sequences (tb) go into one grid block.

    'rows' are packed rows (PACK tokens each).  The VMEM estimate is
    lane-padding aware: every (rows, 128) f32 slab costs rows*128*4 bytes;
    x/out are double-buffered (4 buffers) plus ~12 row-slabs of in-kernel f32
    temporaries (the 256-lane h counts double).  Budget is v7x-safe (64 MiB).
    """
    def rows(tb):
        return tb * rows_per_seq

    def aligned(tb):
        return B // tb == 1 or rows(tb) % 8 == 0

    def fits(tb):
        return rows(tb) * 128 * 4 * (4 + 12) <= vmem_budget

    divisors = [tb for tb in range(1, B + 1) if B % tb == 0]
    cands = [tb for tb in divisors if aligned(tb) and fits(tb)]
    if not cands:
        # TODO(synk): tile the sequence axis (with a 1-row halo) for very long L.
        return min(tb for tb in divisors if aligned(tb))

    def pick(pool):
        big = [tb for tb in pool if rows(tb) >= target_rows]
        return min(big) if big else max(pool)

    even_nb = [tb for tb in cands if (B // tb) % 2 == 0]   # v7x: keep both TCs busy
    multi_nb = [tb for tb in cands if B // tb >= 2]
    return pick(even_nb or multi_nb or cands)


def conv1d_block(x, params, *, tb=None, approx_gelu=False,
                 matmul_dtype=jnp.float32):
    """x: (B, L, D) float32.  params: dict of weights (see init_params)."""
    B, L, D = x.shape
    assert D == D_MODEL and LANES % D == 0
    P = PACK

    L_pad = ((L + P - 1) // P) * P
    if L_pad != L:
        x = jnp.pad(x, ((0, 0), (0, L_pad - L), (0, 0)))
    rows_per_seq = L_pad // P
    total_rows = B * rows_per_seq

    vecs, W1p, W2p, Mavg = _pack_params(params, matmul_dtype)

    if tb is None:
        tb = _pick_batch_tile(B, rows_per_seq)
    assert B % tb == 0
    nb = B // tb
    R4 = tb * rows_per_seq
    assert nb == 1 or R4 % 8 == 0, "block rows must be a multiple of 8"

    # Lane-dense packing: 4 consecutive tokens per 128-lane row (free reshape).
    x2 = x.reshape(total_rows, LANES)

    const = lambda i: (0, 0)
    grid_spec = pltpu.PrefetchScalarGridSpec(
        num_scalar_prefetch=0,
        grid=(nb,),
        in_specs=[
            pl.BlockSpec((R4, LANES), lambda i: (i, 0)),        # activations
            pl.BlockSpec(vecs.shape, const),                    # taps + biases
            pl.BlockSpec(W1p.shape, const),                     # block-diag w1'
            pl.BlockSpec(W2p.shape, const),                     # block-diag w2
            pl.BlockSpec(Mavg.shape, const),                    # LN averaging
        ],
        out_specs=pl.BlockSpec((R4, LANES), lambda i: (i, 0)),
    )
    out2 = pl.pallas_call(
        functools.partial(conv1d_block_kernel, seq_len=L,
                          rows_per_seq=rows_per_seq, approx_gelu=approx_gelu),
        out_shape=jax.ShapeDtypeStruct((total_rows, LANES), x.dtype),
        grid_spec=grid_spec,
        compiler_params=pltpu.CompilerParams(
            dimension_semantics=("parallel",),
            vmem_limit_bytes=32 * 1024 * 1024),
    )(x2, vecs, W1p, W2p, Mavg)

    out = out2.reshape(B, L_pad, D)
    return out[:, :L, :] if L_pad != L else out


def init_params(key, d_model=D_MODEL, kernel_size=KERNEL_SIZE, hidden=HIDDEN):
    """Deterministic synthetic parameter init (shapes match the nn.Module)."""
    ks = jax.random.split(key, 6)
    # depthwise conv weight, torch shape (d_model, 1, K) -> stored tap-major (K, d_model)
    dw_w = jax.random.normal(ks[0], (kernel_size, d_model), jnp.float32) * 0.2
    dw_b = jax.random.normal(ks[1], (1, d_model), jnp.float32) * 0.05
    ln_g = jnp.ones((1, d_model), jnp.float32)
    ln_b = jnp.zeros((1, d_model), jnp.float32)
    # Linears stored as (in, out); equivalent to torch weight (out, in) transposed.
    w1 = jax.random.normal(ks[2], (d_model, hidden), jnp.float32) * (1.0 / d_model ** 0.5)
    b1 = jax.random.normal(ks[3], (1, hidden), jnp.float32) * 0.05
    w2 = jax.random.normal(ks[4], (hidden, d_model), jnp.float32) * (1.0 / hidden ** 0.5)
    b2 = jax.random.normal(ks[5], (1, d_model), jnp.float32) * 0.05
    return dict(dw_w=dw_w, dw_b=dw_b, ln_g=ln_g, ln_b=ln_b,
                w1=w1, b1=b1, w2=w2, b2=b2)


def reference(x, p):
    """Pure-JAX reference of the PyTorch forward (uses the UNfolded params)."""
    pad = (KERNEL_SIZE - 1) // 2
    xpad = jnp.pad(x, ((0, 0), (pad, KERNEL_SIZE - 1 - pad), (0, 0)))
    L = x.shape[1]
    y = sum(xpad[:, k:k + L, :] * p["dw_w"][k][None, None, :]
            for k in range(KERNEL_SIZE)) + p["dw_b"][None]
    mean = jnp.mean(y, axis=-1, keepdims=True)
    var = jnp.mean((y - mean) ** 2, axis=-1, keepdims=True)
    yn = (y - mean) / jnp.sqrt(var + LN_EPS) * p["ln_g"][None] + p["ln_b"][None]
    hi = lax.Precision.HIGHEST
    h = jax.nn.gelu(jnp.einsum("bld,dh->blh", yn, p["w1"], precision=hi)
                    + p["b1"][None], approximate=False)
    return (jnp.einsum("blh,hd->bld", h, p["w2"], precision=hi)
            + p["b2"][None] + x)


if __name__ == "__main__":
    key = jax.random.PRNGKey(0)
    kx, kp = jax.random.split(key)
    B, L = 4, 16
    x = jax.random.normal(kx, (B, L, D_MODEL), jnp.float32)
    params = init_params(kp)

    out = conv1d_block(x, params)            # exact GELU, f32 matmuls (default)
    out = jax.block_until_ready(out)

    ref = reference(x, params)
    assert out.shape == (B, L, D_MODEL)
    err = float(jnp.max(jnp.abs(out - ref)))
    assert jnp.allclose(out, ref, atol=1e-4, rtol=1e-4), (
        "mismatch vs reference: max |diff| = %.3e" % err)
    print("KERNEL_OK")
</pallas_src>

<mosaic_0001>
module attributes {stable_mosaic.version = 11 : i64} {
  func.func @conv1d_block_kernel(%arg0: i32, %arg1: memref<8x128xf32, #tpu.memory_space<vmem>>, %arg2: memref<8x256xf32, #tpu.memory_space<vmem>>, %arg3: memref<128x256xf32, #tpu.memory_space<vmem>>, %arg4: memref<256x128xf32, #tpu.memory_space<vmem>>, %arg5: memref<128x128xf32, #tpu.memory_space<vmem>>, %arg6: memref<8x128xf32, #tpu.memory_space<vmem>>) attributes {dimension_semantics = [#tpu.dimension_semantics<parallel>], iteration_bounds = array<i64: 2>, scalar_prefetch = 0 : i64, scratch_operands = 0 : i64, tpu.core_type = #tpu.core_type<tc>, window_params = [{transform_indices = @transform_0, window_bounds = array<i64: 8, 128>}, {pipeline_mode = #tpu.pipeline_mode<synchronous>, transform_indices = @transform_1, window_bounds = array<i64: 8, 256>}, {pipeline_mode = #tpu.pipeline_mode<synchronous>, transform_indices = @transform_2, window_bounds = array<i64: 128, 256>}, {pipeline_mode = #tpu.pipeline_mode<synchronous>, transform_indices = @transform_3, window_bounds = array<i64: 256, 128>}, {pipeline_mode = #tpu.pipeline_mode<synchronous>, transform_indices = @transform_4, window_bounds = array<i64: 128, 128>}, {transform_indices = @transform_5, window_bounds = array<i64: 8, 128>}]} {
    %c0 = arith.constant 0 : index
    %c0_0 = arith.constant 0 : index
    %0 = vector.load %arg1[%c0, %c0_0] : memref<8x128xf32, #tpu.memory_space<vmem>>, vector<8x128xf32>
    %1 = tpu.iota {dimensions = array<i32: 0>} : vector<8x128xi32>
    %2 = tpu.iota {dimensions = array<i32: 1>} : vector<8x128xi32>
    %3 = arith.sitofp %1 : vector<8x128xi32> to vector<8x128xf32>
    %4 = arith.sitofp %2 : vector<8x128xi32> to vector<8x128xf32>
    %cst = arith.constant 5.000000e-01 : f32
    %5 = vector.broadcast %cst : f32 to vector<8x128xf32>
    %6 = arith.addf %3, %5 : vector<8x128xf32>
    %cst_1 = arith.constant 4.000000e+00 : f32
    %7 = vector.broadcast %cst_1 : f32 to vector<8x128xf32>
    %8 = arith.divf %6, %7 : vector<8x128xf32>
    %9 = math.floor %8 : vector<8x128xf32>
    %cst_2 = arith.constant 5.000000e-01 : f32
    %10 = vector.broadcast %cst_2 : f32 to vector<8x128xf32>
    %11 = arith.addf %4, %10 : vector<8x128xf32>
    %cst_3 = arith.constant 3.200000e+01 : f32
    %12 = vector.broadcast %cst_3 : f32 to vector<8x128xf32>
    %13 = arith.divf %11, %12 : vector<8x128xf32>
    %14 = math.floor %13 : vector<8x128xf32>
    %cst_4 = arith.constant 4.000000e+00 : f32
    %15 = vector.broadcast %cst_4 : f32 to vector<8x128xf32>
    %16 = arith.mulf %9, %15 : vector<8x128xf32>
    %17 = arith.subf %3, %16 : vector<8x128xf32>
    %cst_5 = arith.constant 4.000000e+00 : f32
    %18 = vector.broadcast %cst_5 : f32 to vector<8x128xf32>
    %19 = arith.mulf %17, %18 : vector<8x128xf32>
    %20 = arith.addf %19, %14 : vector<8x128xf32>
    %cst_6 = arith.constant 5.000000e-01 : f32
    %21 = vector.broadcast %cst_6 : f32 to vector<8x128xf32>
    %22 = arith.cmpf oge, %20, %21 : vector<8x128xf32>
    %cst_7 = arith.constant 1.450000e+01 : f32
    %23 = vector.broadcast %cst_7 : f32 to vector<8x128xf32>
    %24 = arith.cmpf ole, %20, %23 : vector<8x128xf32>
    %c0_8 = arith.constant 0 : index
    %c0_9 = arith.constant 0 : index
    %25 = vector.load %arg2[%c0_8, %c0_9] : memref<8x256xf32, #tpu.memory_space<vmem>>, vector<1x128xf32>
    %c1 = arith.constant 1 : index
    %c0_10 = arith.constant 0 : index
    %26 = vector.load %arg2[%c1, %c0_10] : memref<8x256xf32, #tpu.memory_space<vmem>>, vector<1x128xf32>
    %c2 = arith.constant 2 : index
    %c0_11 = arith.constant 0 : index
    %27 = vector.load %arg2[%c2, %c0_11] : memref<8x256xf32, #tpu.memory_space<vmem>>, vector<1x128xf32>
    %c3 = arith.constant 3 : index
    %c0_12 = arith.constant 0 : index
    %28 = vector.load %arg2[%c3, %c0_12] : memref<8x256xf32, #tpu.memory_space<vmem>>, vector<1x128xf32>
    %29 = vector.broadcast %26 : vector<1x128xf32> to vector<8x128xf32>
    %30 = arith.mulf %0, %29 : vector<8x128xf32>
    %31 = vector.broadcast %28 : vector<1x128xf32> to vector<8x128xf32>
    %32 = arith.addf %30, %31 : vector<8x128xf32>
    %c96_i32 = arith.constant 96 : i32
    %33 = tpu.dynamic_rotate %0 by %c96_i32 dim 1 : vector<8x128xf32>, i32 -> vector<8x128xf32>
    %c7_i32 = arith.constant 7 : i32
    %34 = tpu.dynamic_rotate %33 by %c7_i32 dim 0 : vector<8x128xf32>, i32 -> vector<8x128xf32>
    %c96_i32_13 = arith.constant 96 : i32
    %35 = vector.broadcast %c96_i32_13 : i32 to vector<8x128xi32>
    %36 = arith.cmpi sge, %2, %35 : vector<8x128xi32>
    %37 = arith.select %36, %34, %33 : vector<8x128xi1>, vector<8x128xf32>
    %cst_14 = arith.constant 0.000000e+00 : f32
    %38 = vector.broadcast %cst_14 : f32 to vector<8x128xf32>
    %39 = arith.select %24, %37, %38 : vector<8x128xi1>, vector<8x128xf32>
    %40 = vector.broadcast %27 : vector<1x128xf32> to vector<8x128xf32>
    %41 = arith.mulf %39, %40 : vector<8x128xf32>
    %42 = arith.addf %32, %41 : vector<8x128xf32>
    %c32_i32 = arith.constant 32 : i32
    %43 = tpu.dynamic_rotate %0 by %c32_i32 dim 1 : vector<8x128xf32>, i32 -> vector<8x128xf32>
    %c1_i32 = arith.constant 1 : i32
    %44 = tpu.dynamic_rotate %43 by %c1_i32 dim 0 : vector<8x128xf32>, i32 -> vector<8x128xf32>
    %c32_i32_15 = arith.constant 32 : i32
    %45 = vector.broadcast %c32_i32_15 : i32 to vector<8x128xi32>
    %46 = arith.cmpi slt, %2, %45 : vector<8x128xi32>
    %47 = arith.select %46, %44, %43 : vector<8x128xi1>, vector<8x128xf32>
    %cst_16 = arith.constant 0.000000e+00 : f32
    %48 = vector.broadcast %cst_16 : f32 to vector<8x128xf32>
    %49 = arith.select %22, %47, %48 : vector<8x128xi1>, vector<8x128xf32>
    %50 = vector.broadcast %25 : vector<1x128xf32> to vector<8x128xf32>
    %51 = arith.mulf %49, %50 : vector<8x128xf32>
    %52 = arith.addf %42, %51 : vector<8x128xf32>
    %c0_17 = arith.constant 0 : index
    %c0_18 = arith.constant 0 : index
    %53 = vector.load %arg5[%c0_17, %c0_18] : memref<128x128xf32, #tpu.memory_space<vmem>>, vector<128x128xf32>
    %cst_19 = arith.constant dense<0.000000e+00> : vector<8x128xf32>
    %54 = tpu.matmul %52, %53, %cst_19 {dimension_numbers = #tpu.dot_dimension_numbers<[1], [0], [0], [1], [0, 0, 1, 1], [], []>} : vector<8x128xf32>, vector<128x128xf32>, vector<8x128xf32> -> vector<8x128xf32>
    %55 = arith.subf %52, %54 : vector<8x128xf32>
    %56 = arith.mulf %55, %55 : vector<8x128xf32>
    %cst_20 = arith.constant dense<0.000000e+00> : vector<8x128xf32>
    %57 = tpu.matmul %56, %53, %cst_20 {dimension_numbers = #tpu.dot_dimension_numbers<[1], [0], [0], [1], [0, 0, 1, 1], [], []>} : vector<8x128xf32>, vector<128x128xf32>, vector<8x128xf32> -> vector<8x128xf32>
    %cst_21 = arith.constant 9.99999974E-6 : f32
    %58 = vector.broadcast %cst_21 : f32 to vector<8x128xf32>
    %59 = arith.addf %57, %58 : vector<8x128xf32>
    %60 = math.rsqrt %59 : vector<8x128xf32>
    %61 = arith.mulf %55, %60 : vector<8x128xf32>
    %c0_22 = arith.constant 0 : index
    %c0_23 = arith.constant 0 : index
    %62 = vector.load %arg3[%c0_22, %c0_23] : memref<128x256xf32, #tpu.memory_space<vmem>>, vector<128x256xf32>
    %cst_24 = arith.constant dense<0.000000e+00> : vector<8x256xf32>
    %63 = tpu.matmul %61, %62, %cst_24 {dimension_numbers = #tpu.dot_dimension_numbers<[1], [0], [0], [1], [0, 0, 1, 1], [], []>} : vector<8x128xf32>, vector<128x256xf32>, vector<8x256xf32> -> vector<8x256xf32>
    %c4 = arith.constant 4 : index
    %c0_25 = arith.constant 0 : index
    %64 = vector.load %arg2[%c4, %c0_25] : memref<8x256xf32, #tpu.memory_space<vmem>>, vector<1x256xf32>
    %65 = vector.broadcast %64 : vector<1x256xf32> to vector<8x256xf32>
    %66 = arith.addf %63, %65 : vector<8x256xf32>
    %cst_26 = arith.constant 5.000000e-01 : f32
    %67 = vector.broadcast %cst_26 : f32 to vector<8x256xf32>
    %68 = arith.mulf %67, %66 : vector<8x256xf32>
    %cst_27 = arith.constant 0.707106769 : f32
    %69 = vector.broadcast %cst_27 : f32 to vector<8x256xf32>
    %70 = arith.mulf %66, %69 : vector<8x256xf32>
    %71 = math.absf %70 : vector<8x256xf32>
    %cst_28 = arith.constant 0.327591091 : f32
    %72 = vector.broadcast %cst_28 : f32 to vector<8x256xf32>
    %73 = arith.mulf %72, %71 : vector<8x256xf32>
    %cst_29 = arith.constant 1.000000e+00 : f32
    %74 = vector.broadcast %cst_29 : f32 to vector<8x256xf32>
    %75 = arith.addf %74, %73 : vector<8x256xf32>
    %cst_30 = arith.constant 1.000000e+00 : f32
    %76 = vector.broadcast %cst_30 : f32 to vector<8x256xf32>
    %77 = arith.divf %76, %75 : vector<8x256xf32>
    %cst_31 = arith.constant 1.06140542 : f32
    %78 = vector.broadcast %cst_31 : f32 to vector<8x256xf32>
    %79 = arith.mulf %77, %78 : vector<8x256xf32>
    %cst_32 = arith.constant -1.45315206 : f32
    %80 = vector.broadcast %cst_32 : f32 to vector<8x256xf32>
    %81 = arith.addf %80, %79 : vector<8x256xf32>
    %82 = arith.mulf %77, %81 : vector<8x256xf32>
    %cst_33 = arith.constant 1.42141378 : f32
    %83 = vector.broadcast %cst_33 : f32 to vector<8x256xf32>
    %84 = arith.addf %83, %82 : vector<8x256xf32>
    %85 = arith.mulf %77, %84 : vector<8x256xf32>
    %cst_34 = arith.constant -0.284496725 : f32
    %86 = vector.broadcast %cst_34 : f32 to vector<8x256xf32>
    %87 = arith.addf %86, %85 : vector<8x256xf32>
    %88 = arith.mulf %77, %87 : vector<8x256xf32>
    %cst_35 = arith.constant 0.254829586 : f32
    %89 = vector.broadcast %cst_35 : f32 to vector<8x256xf32>
    %90 = arith.addf %89, %88 : vector<8x256xf32>
    %91 = arith.mulf %77, %90 : vector<8x256xf32>
    %cst_36 = arith.constant 0.000000e+00 : f32
    %92 = vector.broadcast %cst_36 : f32 to vector<8x256xf32>
    %93 = arith.subf %92, %71 : vector<8x256xf32>
    %94 = arith.mulf %93, %71 : vector<8x256xf32>
    %95 = math.exp %94 : vector<8x256xf32>
    %96 = arith.mulf %91, %95 : vector<8x256xf32>
    %cst_37 = arith.constant 1.000000e+00 : f32
    %97 = vector.broadcast %cst_37 : f32 to vector<8x256xf32>
    %98 = arith.subf %97, %96 : vector<8x256xf32>
    %cst_38 = arith.constant 0.000000e+00 : f32
    %99 = vector.broadcast %cst_38 : f32 to vector<8x256xf32>
    %100 = arith.cmpf olt, %70, %99 : vector<8x256xf32>
    %cst_39 = arith.constant 0.000000e+00 : f32
    %101 = vector.broadcast %cst_39 : f32 to vector<8x256xf32>
    %102 = arith.subf %101, %98 : vector<8x256xf32>
    %103 = arith.select %100, %102, %98 : vector<8x256xi1>, vector<8x256xf32>
    %cst_40 = arith.constant 1.000000e+00 : f32
    %104 = vector.broadcast %cst_40 : f32 to vector<8x256xf32>
    %105 = arith.addf %104, %103 : vector<8x256xf32>
    %106 = arith.mulf %68, %105 : vector<8x256xf32>
    %c0_41 = arith.constant 0 : index
    %c0_42 = arith.constant 0 : index
    %107 = vector.load %arg4[%c0_41, %c0_42] : memref<256x128xf32, #tpu.memory_space<vmem>>, vector<256x128xf32>
    %cst_43 = arith.constant dense<0.000000e+00> : vector<8x128xf32>
    %108 = tpu.matmul %106, %107, %cst_43 {dimension_numbers = #tpu.dot_dimension_numbers<[1], [0], [0], [1], [0, 0, 1, 1], [], []>} : vector<8x256xf32>, vector<256x128xf32>, vector<8x128xf32> -> vector<8x128xf32>
    %c5 = arith.constant 5 : index
    %c0_44 = arith.constant 0 : index
    %109 = vector.load %arg2[%c5, %c0_44] : memref<8x256xf32, #tpu.memory_space<vmem>>, vector<1x128xf32>
    %110 = vector.broadcast %109 : vector<1x128xf32> to vector<8x128xf32>
    %111 = arith.addf %108, %110 : vector<8x128xf32>
    %112 = arith.addf %111, %0 : vector<8x128xf32>
    %c0_45 = arith.constant 0 : index
    %c0_46 = arith.constant 0 : index
    %113 = vector.load %arg6[%c0_45, %c0_46] : memref<8x128xf32, #tpu.memory_space<vmem>>, vector<8x128xf32>
    tpu.vector_store %arg6[%c0_45, %c0_46], %112 {strides = array<i32>} : memref<8x128xf32, #tpu.memory_space<vmem>>, vector<8x128xf32>,
    return
  }
  func.func @transform_0(%arg0: i32) -> (i32, i32) {
    %c0_i32 = arith.constant 0 : i32
    %c0_i32_0 = arith.constant 0 : i32
    return %arg0, %c0_i32 : i32, i32
  }
  func.func @transform_1(%arg0: i32) -> (i32, i32) {
    %c0_i32 = arith.constant 0 : i32
    %c0_i32_0 = arith.constant 0 : i32
    %c0_i32_1 = arith.constant 0 : i32
    return %c0_i32, %c0_i32_0 : i32, i32
  }
  func.func @transform_2(%arg0: i32) -> (i32, i32) {
    %c0_i32 = arith.constant 0 : i32
    %c0_i32_0 = arith.constant 0 : i32
    %c0_i32_1 = arith.constant 0 : i32
    return %c0_i32, %c0_i32_0 : i32, i32
  }
  func.func @transform_3(%arg0: i32) -> (i32, i32) {
    %c0_i32 = arith.constant 0 : i32
    %c0_i32_0 = arith.constant 0 : i32
    %c0_i32_1 = arith.constant 0 : i32
    return %c0_i32, %c0_i32_0 : i32, i32
  }
  func.func @transform_4(%arg0: i32) -> (i32, i32) {
    %c0_i32 = arith.constant 0 : i32
    %c0_i32_0 = arith.constant 0 : i32
    %c0_i32_1 = arith.constant 0 : i32
    return %c0_i32, %c0_i32_0 : i32, i32
  }
  func.func @transform_5(%arg0: i32) -> (i32, i32) {
    %c0_i32 = arith.constant 0 : i32
    %c0_i32_0 = arith.constant 0 : i32
    return %arg0, %c0_i32 : i32, i32
  }
}

</mosaic_0001>

<bundles_post_ra>
// kernel: tpu_custom_call.1
= control target key start
LH: loop header
LB: loop body
LE: loop exit
PB: predicated region body
PF: predicated region fallthrough
CT: control target
= control target key end

     0   :  { %10 = vsyncpa [#allocation3], 0  ;;  %s1833_s0 = inlined_call_operand.hbm [shape: f32[16,128], index: 0, kind: input, shape index: {}]   ;;  %s1834_s1 = inlined_call_operand.hbm [shape: f32[8,256], index: 1, kind: input, shape index: {}]   ;;  %s1835_s2 = inlined_call_operand.hbm [shape: f32[128,256], index: 2, kind: input, shape index: {}]   ;;  %s1836_s3 = inlined_call_operand.hbm [shape: f32[256,128], index: 3, kind: input, shape index: {}]   ;;  %s1837_s4 = inlined_call_operand.hbm [shape: f32[128,128], index: 4, kind: input, shape index: {}]   ;;  %s1838_s5 = inlined_call_operand.hbm [shape: f32[16,128], index: 5, kind: output, shape index: {}]  }
   0x1   :  { %12 = vsyncpa [#allocation3 + $0x1], 0 }
   0x2   :  { %13 = vsyncpa [#allocation6], 0 }
   0x3   :  { %14 = vsyncpa [#allocation9], 0 }
   0x4   :  { %15 = vsyncpa [#allocation4], 0 }
   0x5   :  { %17 = vsyncpa [#allocation4 + $0x1], 0  ;;  %s1536_s18 = smov 0   ;;  %s1538_s19 = smov 0  }
   0x6   :  { %s1540_s20 = smov 0   ;;  %s1542_s21 = smov 0  }
   0x7 LB: > { %s1491_s22 = smov [#allocation5]   ;;  %s1557_s24 = sadd.s32 4294967295, %s1489_s21   ;;  %s1489_s21 = sphi %s1542_s21, %s1862_s21   ;;  %s1485_s20 = sphi %s1540_s20, %s1861_s20   ;;  %s1481_s19 = sphi %s1538_s19, %s1860_s19   ;;  %s1477_s18 = sphi %s1536_s18, %s1859_s18  }
   0x8   : > { %s177_s23 = sshll.u32 %s1491_s22, 4  ;;  %p897_p0 = scmp.ge.s32.totalorder %s1489_s21, 1  ;;  %s178_s23 = int_to_ptr.vmem [resolvable:$true] %s177_s23 }
   0x9   : > { %p1839_p1 = scmp.eq.s32.totalorder %s1557_s24, 0  ;;  %p164_p2 = scmp.lt.s32.totalorder %s1489_s21, 3 }
   0xa   : > { %s1492_s26 = smov [#allocation8]   ;;  %s1493_s29 = smov [#allocation7]  }
   0xb   : > { %p1562_p3 = pnand %p897_p0, %p164_p2  ;;  %s200_s27 = sshll.u32 %s1492_s26, 4  ;;  %s1569_s27 = int_to_ptr.vmem [resolvable:$true] %s200_s27 }
   0xc   : > { %s187_s30 = sshll.u32 %s1493_s29, 4  ;;  %s1273_s8 = scalar_lea.hbm %s1834_s1, 256  ;;  %s1577_s30 = int_to_ptr.vmem [resolvable:$true] %s187_s30 }
   0xd   : > { %s1842_s25 = scalar_select %p1562_p3, 1, 0 }
   0xe   : > { %p1187_p5 = pneg %p1562_p3  ;;  %p1274_p7 = scmp.ne.s32.totalorder %s1834_s1, %s1273_s8 }
   0xf   : > { %p1280_p11 = scmp.lt.u32.totalorder %s1273_s8, %s1834_s1 }
  0x10   : > { %p1573_p6 = pnand %p1187_p5, %p1839_p1 }
  0x12   : > { %p1587_p8 = pneg %p1573_p6 }
  0x14   : > { %p1276_p9 = pnand %p1587_p8, %p1274_p7 }
  0x16   : > { %p1277_p10 = pneg %p1276_p9 }
  0x18   : > { %p1282_p12 = pnand %p1280_p11, %p1277_p10 }
  0x1a   : > { %1285 = shalt.err (!%p1282_p12)
}
  0x1b   : > { %s1286_s14 = scalar_lea.vmem %s178_s23, 256  ;;  %p1294_p5 = scmp.lt.s32.totalorder %s178_s23, %s178_s23 }
  0x1c   : > { %p1287_p13 = scmp.ne.s32.totalorder %s178_s23, %s1286_s14  ;;  %p1295_p4 = scmp.lt.s32.totalorder %s1286_s14, %s1286_s14 }
  0x1e   : > { %p1289_p0 = pnand %p1287_p13, %p1587_p8  ;;  %p1296_p1 = por %p1295_p4, %p1294_p5 }
  0x20   : > { %p1290_p2 = pneg %p1289_p0 }
  0x22   : > { %p1297_p3 = pnand %p1296_p1, %p1290_p2 }
  0x24   : > { %1300 = shalt.err (!%p1297_p3)
}
  0x25   : > { %1190 = dma.hbm_to_vmem [thread:$0]  (!%p1573_p6), %s1834_s1, 256, %s178_s23, [#allocation6]  }
  0x26   : > { %s1301_s26 = scalar_lea.hbm %s1836_s3, 4096 }
  0x27   : > { %p1302_p7 = scmp.ne.s32.totalorder %s1836_s3, %s1301_s26  ;;  %p1308_p1 = scmp.lt.u32.totalorder %s1301_s26, %s1836_s3 }
  0x29   : > { %p1304_p9 = pnand %p1302_p7, %p1587_p8 }
  0x2b   : > { %p1305_p4 = pneg %p1304_p9 }
  0x2d   : > { %p1310_p3 = pnand %p1308_p1, %p1305_p4 }
  0x2f   : > { %1313 = shalt.err (!%p1310_p3)
}
  0x30   : > { %s1314_s23 = scalar_lea.vmem %s1569_s27, 4096  ;;  %p1322_p13 = scmp.lt.s32.totalorder %s1569_s27, %s1569_s27 }
  0x31   : > { %p1315_p10 = scmp.ne.s32.totalorder %s1569_s27, %s1314_s23  ;;  %p1323_p0 = scmp.lt.s32.totalorder %s1314_s23, %s1314_s23 }
  0x33   : > { %p1317_p11 = pnand %p1315_p10, %p1587_p8  ;;  %p1324_p2 = por %p1323_p0, %p1322_p13 }
  0x35   : > { %p1318_p12 = pneg %p1317_p11 }
  0x37   : > { %p1325_p5 = pnand %p1324_p2, %p1318_p12 }
  0x39   : > { %1328 = shalt.err (!%p1325_p5)
}
  0x3a   : > { %s1494_s9 = smov 128   ;;  %s1495_s10 = smov 8  }
  0x3b   : > { %1196 = dma.hbm_to_vmem [thread:$0]  (!%p1573_p6), %s1836_s3, 4096, %s1569_s27, [#allocation9], %s1494_s9, %s1494_s9, %s1495_s10  }
  0x3c   : > { %s1329_s16 = scalar_lea.hbm %s1835_s2, 4096 }
  0x3d   : > { %p1330_p7 = scmp.ne.s32.totalorder %s1835_s2, %s1329_s16  ;;  %p1336_p1 = scmp.lt.u32.totalorder %s1329_s16, %s1835_s2 }
  0x3f   : > { %p1332_p9 = pnand %p1330_p7, %p1587_p8 }
  0x41   : > { %p1333_p4 = pneg %p1332_p9 }
  0x43   : > { %p1338_p3 = pnand %p1336_p1, %p1333_p4 }
  0x45   : > { %1341 = shalt.err (!%p1338_p3)
}
  0x46   : > { %s1342_s27 = scalar_lea.vmem %s1577_s30, 4096  ;;  %p1350_p13 = scmp.lt.s32.totalorder %s1577_s30, %s1577_s30 }
  0x47   : > { %p1343_p10 = scmp.ne.s32.totalorder %s1577_s30, %s1342_s27  ;;  %p1351_p0 = scmp.lt.s32.totalorder %s1342_s27, %s1342_s27 }
  0x49   : > { %p1345_p11 = pnand %p1343_p10, %p1587_p8  ;;  %p1352_p2 = por %p1351_p0, %p1350_p13 }
  0x4b   : > { %p1346_p12 = pneg %p1345_p11 }
  0x4d   : > { %p1353_p5 = pnand %p1352_p2, %p1346_p12 }
  0x4f   : > { %1356 = shalt.err (!%p1353_p5)
}
  0x50   : > { %s1496_s6 = smov 256   ;;  %s1497_s7 = smov 16  }
  0x51   : > { %1193 = dma.hbm_to_vmem [thread:$0]  (!%p1573_p6), %s1835_s2, 4096, %s1577_s30, [#allocation6], %s1496_s6, %s1496_s6, %s1497_s7  }
  0x52   : > { %s1498_s12 = smov [#allocation10]   ;;  %s1357_s16 = scalar_lea.hbm %s1837_s4, 2048 }
  0x53   : > { %s213_s13 = sshll.u32 %s1498_s12, 4  ;;  %p1358_p7 = scmp.ne.s32.totalorder %s1837_s4, %s1357_s16  ;;  %s214_s13 = int_to_ptr.vmem [resolvable:$true] %s213_s13 }
  0x54   : > { %p1364_p1 = scmp.lt.u32.totalorder %s1357_s16, %s1837_s4 }
  0x55   : > { %p1360_p9 = pnand %p1358_p7, %p1587_p8 }
  0x57   : > { %p1361_p4 = pneg %p1360_p9 }
  0x59   : > { %p1366_p3 = pnand %p1364_p1, %p1361_p4 }
  0x5b   : > { %1369 = shalt.err (!%p1366_p3)
}
  0x5c   : > { %s1370_s30 = scalar_lea.vmem %s214_s13, 2048  ;;  %p1378_p13 = scmp.lt.s32.totalorder %s214_s13, %s214_s13 }
  0x5d   : > { %p1371_p10 = scmp.ne.s32.totalorder %s214_s13, %s1370_s30  ;;  %p1379_p0 = scmp.lt.s32.totalorder %s1370_s30, %s1370_s30 }
  0x5f   : > { %p1373_p11 = pnand %p1371_p10, %p1587_p8  ;;  %p1380_p2 = por %p1379_p0, %p1378_p13 }
  0x61   : > { %p1374_p12 = pneg %p1373_p11 }
  0x63   : > { %p1381_p5 = pnand %p1380_p2, %p1374_p12 }
  0x65   : > { %1384 = shalt.err (!%p1381_p5)
}
  0x66   : > { %1199 = dma.hbm_to_vmem [thread:$0]  (!%p1573_p6), %s1837_s4, 2048, %s214_s13, [#allocation9], %s1494_s9, %s1494_s9, %s1495_s10  }
  0x67   : > { %s896_s28 = sadd.s32 4294967294, %s1489_s21   ;;  %s1675_s11 = sadd.s32 1, %s1489_s21  }
  0x68   : > { %s27_s7 = ssub.s32 %s1489_s21, %s1675_s11  ;;  %s30_s8 = sadd.s32 1, %s1485_s20 }
  0x69   : > { %p28_p8 = scmp.eq.s32.totalorder %s27_s7, 0  ;;  %p37_p7 = scmp.ne.s32.totalorder %s1485_s20, %s1481_s19 }
  0x6a   : > { %p38_p9 = scmp.eq.s32.totalorder %s1489_s21, 0  ;;  %p43_p4 = scmp.ne.s32.totalorder %s1481_s19, %s1477_s18 }
  0x6b   : > { %s1686_s23 = scalar_select %p28_p8, %s1485_s20, %s30_s8  }
  0x6c   : > { %p1688_p1 = por %p38_p9, %p37_p7  ;;  %p1846_p3 = scmp.eq.s32.totalorder %s1557_s24, 0 }
  0x6d   : > { %p151_p10 = scmp.eq.s32.totalorder %s1557_s24, 1  ;;  %p157_p11 = scmp.eq.s32.totalorder %s896_s28, 1 }
  0x6e   : > { %p1694_p6 = por %p1846_p3, %p43_p4  ;;  %p1212_p12 = scmp.lt.s32.totalorder %s1489_s21, 2 }
  0x6f   : > { %s227_s10 = sand.u32 1, %s1485_s20   ;;  %p1701_p13 = por %p151_p10, %p37_p7 }
  0x70   : > { %p1705_p0 = por %p157_p11, %p43_p4  ;;  %s903_s15 = sshll.u32 %s227_s10, 3 }
  0x71   : > { %s1848_s13 = scalar_select %p1701_p13, 1, 0 }
  0x72   : > { %s1849_s14 = scalar_select %p1705_p0, 1, 0 }
  0x73   : > { %s904_s16 = sshll.u32 %s1489_s21, 7  ;;  %s231_s29 = scalar_lea.vmem [#allocation2], %s903_s15 }
  0x74   : > { %s1713_s26 = scalar_lea.hbm %s1833_s0, %s904_s16  ;;  %s238_s30 = sshll.u32 %s231_s29, 4  ;;  %s1715_s30 = int_to_ptr.vmem [resolvable:$true] %s238_s30 }
  0x75   : > { %p1719_p2 = pnand %p1212_p12, %p1688_p1  ;;  %s228_s6 = scalar_lea.sflag [#allocation3], %s227_s10 }
  0x76   : > { %s1385_s28 = scalar_lea.hbm %s1713_s26, 128  ;;  %s1390_s15 = scalar_lea.hbm %s1833_s0, 256 }
  0x77   : > { %p1386_p5 = scmp.ne.s32.totalorder %s1713_s26, %s1385_s28  ;;  %p1387_p8 = pneg %p1719_p2 }
  0x78   : > { %p1391_p4 = scmp.lt.u32.totalorder %s1713_s26, %s1833_s0  ;;  %p1392_p1 = scmp.lt.u32.totalorder %s1390_s15, %s1385_s28 }
  0x79   : > { %p1388_p7 = pnand %p1387_p8, %p1386_p5  ;;  %p1394_p10 = scmp.lt.u32.totalorder %s1385_s28, %s1713_s26 }
  0x7a   : > { %p1393_p3 = por %p1392_p1, %p1391_p4 }
  0x7b   : > { %p1389_p9 = pneg %p1388_p7 }
  0x7c   : > { %p1395_p11 = por %p1394_p10, %p1393_p3 }
  0x7e   : > { %p1396_p12 = pnand %p1395_p11, %p1389_p9 }
  0x80   : > { %1399 = shalt.err (!%p1396_p12)
}
  0x81   : > { %s1400_s10 = scalar_lea.vmem %s1715_s30, 128  ;;  %s1499_s17 = smov [#allocation2]  }
  0x82   : > { %p1401_p5 = scmp.ne.s32.totalorder %s1715_s30, %s1400_s10  ;;  %s1405_s22 = sshll.u32 %s1499_s17, 4  ;;  %s1406_s22 = int_to_ptr.vmem [resolvable:$false] %s1405_s22 }
  0x83   : > { %s1407_s29 = scalar_lea.vmem %s1406_s22, 256  ;;  %p1408_p13 = scmp.lt.s32.totalorder %s1715_s30, %s1406_s22 }
  0x84   : > { %p1403_p7 = pnand %p1401_p5, %p1387_p8  ;;  %p1409_p4 = scmp.lt.s32.totalorder %s1407_s29, %s1400_s10 }
  0x86   : > { %p1404_p0 = pneg %p1403_p7  ;;  %p1410_p1 = por %p1409_p4, %p1408_p13 }
  0x88   : > { %p1411_p3 = pnand %p1410_p1, %p1404_p0 }
  0x8a   : > { %1414 = shalt.err (!%p1411_p3)
}
  0x8b   : > { %1203 = dma.hbm_to_vmem [thread:$0]  (!%p1719_p2), %s1713_s26, 128, %s1715_s30, %s228_s6  }
  0x8c   : > { %p1851_p9 = scmp.ne.s32.totalorder %s1842_s25, 0 }
  0x8d   : > { %s1751_s28 = sand.u32 (!%p1851_p9), 1, %s1481_s19  }
  0x8e   : > { %247 = sbr.rel (%p1851_p9) target bundleno = 1227 (0x4cb), region = 40  ;;  %s906_s7 = sshll.u32 (!%p1851_p9), %s1751_s28, 3 }
  0x8f   : > { %s250_s8 = scalar_lea.sflag (!%p1851_p9), [#allocation3], %s1751_s28  ;;  %s253_s15 = scalar_lea.vmem (!%p1851_p9), [#allocation2], %s906_s7 }
  0x95   : > { %1460 = dma.done.wait (%p1694_p6), %s250_s8, 128  }
  0x96   : > { %1462 = vsyncadd (%p1694_p6), %s250_s8, 4294967168  ;;  %p1852_p13 = scmp.eq.s32.totalorder %s1557_s24, 0 }
  0x98   : > { %1464 = dma.done.wait (%p1852_p13), [#allocation6], 4352   ;;  %p1853_p0 = pmov %p1852_p13 }
  0x9a   : > { %1466 = vsyncadd (%p1853_p0), [#allocation6], 4294962944  ;;  %p1854_p2 = pmov %p1853_p0 }
  0x9b   : > { %p1855_p8 = pmov %p1853_p0 }
  0x9c   : > { %1468 = dma.done.wait (%p1854_p2), [#allocation9], 6144  }
  0x9d   : > { %1470 = vsyncadd (%p1855_p8), [#allocation9], 4294961152  ;;  %v1500_v0 = vmov 0.0|0.0   ;;  %vm1501_vm0 = vmmov 0   ;;  %v1502_v1 = vmov 0.0   ;;  %v1771_v2 = vld [vmem:[%s253_s15] sm:$0xff]  ;;  %v297_v27 = vlaneseq }
  0x9e   : > { %1055 = vmatprep.subr.bf16.mxu0 %v1500_v0  ;;  %1079 = vmatprep.subr.bf16.mxu1 %v1500_v0  ;;  %v339_v3 = vld [vmem:[#allocation10] sm:$0xff]  ;;  %s1503_s25 = smov 96   ;;  %v340_v4 = vld [vmem:[#allocation10 + $0x8] sm:$0xff]  ;;  %v341_v5 = vld [vmem:[#allocation10 + $0x10] sm:$0xff]  ;;  %s1504_s9 = smov 32  }
  0x9f   : > { %1017 = vmatprep.mubr.msk.f32.mxu0 %vm1501_vm0, %v1502_v1  ;;  %1052 = vmatprep.mubr.msk.f32.mxu1 %vm1501_vm0, %v1502_v1  ;;  %v342_v6 = vld [vmem:[#allocation10 + $0x18] sm:$0xff]  ;;  %v1056_v7 = vpack.c.bf16 %v340_v4, %v339_v3  ;;  %v343_v9 = vld [vmem:[#allocation10 + $0x20] sm:$0xff]  ;;  %v344_v10 = vld [vmem:[#allocation10 + $0x28] sm:$0xff]  ;;  %v1775_v28 = vshrl.u32 %v297_v27, 7  ;;  %v300_v31 = vand.u32 127, %v297_v27  ;;  %s913_s26 = sshll.u32 %s1557_s24, 7 }
  0xa0   : > { %323 = vrot.lane.b32.xlu0 %v1771_v2, %s1503_s25  ;;  %v1059_v8 = vpack.c.bf16 %v342_v6, %v341_v5  ;;  %v1062_v11 = vpack.c.bf16 %v344_v10, %v343_v9  ;;  %v345_v12 = vld [vmem:[#allocation10 + $0x30] sm:$0xff]  ;;  %v346_v13 = vld [vmem:[#allocation10 + $0x38] sm:$0xff]  ;;  %v347_v15 = vld [vmem:[#allocation10 + $0x40] sm:$0xff]  ;;  %s295_s30 = scalar_lea.vmem [#allocation11], %s906_s7  ;;  %s1789_s16 = scalar_lea.hbm %s1838_s5, %s913_s26 }
  0xa1   : > { %1057 = vmatpush3.bf16.msra.mxu0 %v1056_v7  ;;  %1081 = vmatpush3.bf16.msra.mxu1 %v1056_v7  ;;  %v1065_v14 = vpack.c.bf16 %v346_v13, %v345_v12  ;;  %v348_v16 = vld [vmem:[#allocation10 + $0x48] sm:$0xff]  ;;  %v349_v18 = vld [vmem:[#allocation10 + $0x50] sm:$0xff]  ;;  %v350_v19 = vld [vmem:[#allocation10 + $0x58] sm:$0xff]  ;;  %v301_v29 = vcvt.s32.f32 %v1775_v28  ;;  %v302_v33 = vcvt.s32.f32 %v300_v31  ;;  %vm326_vm1 = vcmp.ge.s32.totalorder %v300_v31, 96  ;;  %s788_s27 = sshll.u32 %s295_s30, 4  ;;  %s775_s10 = scalar_lea.sflag [#allocation4], %s1751_s28  ;;  %s1791_s27 = int_to_ptr.vmem [resolvable:$true] %s788_s27 }
  0xa2   : > { %1058 = vmatprep.subr.bf16.mxu0 %v1500_v0  ;;  %1082 = vmatprep.subr.bf16.mxu1 %v1500_v0  ;;  %v1068_v17 = vpack.c.bf16 %v348_v16, %v347_v15  ;;  %v1071_v20 = vpack.c.bf16 %v350_v19, %v349_v18  ;;  %v351_v21 = vld [vmem:[#allocation10 + $0x60] sm:$0xff]  ;;  %v352_v22 = vld [vmem:[#allocation10 + $0x68] sm:$0xff]  ;;  %v353_v24 = vld [vmem:[#allocation10 + $0x70] sm:$0xff]  ;;  %vm334_vm3 = vcmp.lt.s32.totalorder %v300_v31, 32  ;;  %s1415_s17 = scalar_lea.vmem %s1791_s27, 128  ;;  %p1856_p10 = scmp.ne.s32.totalorder %s1848_s13, 0 }
  0xa3   : > { %v1074_v23 = vpack.c.bf16 %v352_v22, %v351_v21  ;;  %v354_v25 = vld [vmem:[#allocation10 + $0x78] sm:$0xff]  ;;  %v303_v30 = vadd.f32 0.5, %v301_v29  ;;  %v307_v35 = vadd.f32 0.5, %v302_v33  ;;  %v318_v42 = vld [vmem:[#allocation5 + $0x1] ss:$0 sm:$0xff]  ;;  %v500_v60 = vld [vmem:[#allocation7 + $0x8] sm:$0xff]  ;;  %p1416_p6 = scmp.ne.s32.totalorder %s1791_s27, %s1415_s17 }
  0xa4   : > { %331 = vrot.lane.b32.xlu0 %v1771_v2, %s1504_s9  ;;  %v1077_v26 = vpack.c.bf16 %v354_v25, %v353_v24  ;;  %v321_v44 = vmul.f32 %v318_v42, %v1771_v2  ;;  %v319_v46 = vld [vmem:[#allocation5 + $0x2] ss:$0 sm:$0xff]  ;;  %v320_v47 = vld [vmem:[#allocation5 + $0x3] ss:$0 sm:$0xff]  ;;  %v317_v54 = vld [vmem:[#allocation5] ss:$0 sm:$0xff] }
  0xa5   : > { %1060 = vmatpush3.bf16.msra.mxu0 %v1059_v8  ;;  %1084 = vmatpush3.bf16.msra.mxu1 %v1059_v8  ;;  %v305_v32 = vmul.f32 0.25, %v303_v30  ;;  %v309_v37 = vmul.f32 0.03125, %v307_v35  ;;  %v502_v61 = vld [vmem:[#allocation7 + $0x18] sm:$0xff]  ;;  %v499_v62 = vld [vmem:[#allocation7] sm:$0xff]  ;;  %v504_v3 = vld [vmem:[#allocation7 + $0x28] sm:$0xff]  ;;  %p1417_p11 = pnand %p1416_p6, %p1856_p10  ;;  %s1505_s24 = smov [#allocation11]  }
  0xa6   : > { %1061 = vmatprep.subr.bf16.mxu0 %v1500_v0  ;;  %1085 = vmatprep.subr.bf16.mxu1 %v1500_v0  ;;  %v322_v51 = vadd.f32 %v321_v44, %v320_v47  ;;  %v1103_v63 = vpack.c.bf16 %v502_v61, %v500_v60  ;;  %v506_v4 = vld [vmem:[#allocation7 + $0x38] sm:$0xff]  ;;  %v503_v7 = vld [vmem:[#allocation7 + $0x20] sm:$0xff]  ;;  %v505_v8 = vld [vmem:[#allocation7 + $0x30] sm:$0xff]  ;;  %s1419_s22 = sshll.u32 %s1505_s24, 4  ;;  %s1420_s22 = int_to_ptr.vmem [resolvable:$false] %s1419_s22 }
  0xa7   : > { %v306_v34 = vfloor.f32 %v305_v32  ;;  %v310_v39 = vfloor.f32 %v309_v37  ;;  %v1107_v6 = vpack.c.bf16 %v506_v4, %v504_v3  ;;  %v508_v9 = vld [vmem:[#allocation7 + $0x48] sm:$0xff]  ;;  %v510_v10 = vld [vmem:[#allocation7 + $0x58] sm:$0xff]  ;;  %v507_v13 = vld [vmem:[#allocation7 + $0x40] sm:$0xff]  ;;  %p1418_p12 = pneg %p1417_p11  ;;  %s1421_s29 = scalar_lea.vmem %s1420_s22, 256 }
  0xa8   : > { %v1111_v12 = vpack.c.bf16 %v510_v10, %v508_v9  ;;  %v514_v15 = vld [vmem:[#allocation7 + $0x78] sm:$0xff]  ;;  %v511_v18 = vld [vmem:[#allocation7 + $0x60] sm:$0xff]  ;;  %v513_v19 = vld [vmem:[#allocation7 + $0x70] sm:$0xff]  ;;  %p1422_p5 = scmp.lt.s32.totalorder %s1791_s27, %s1420_s22  ;;  %p1423_p7 = scmp.lt.s32.totalorder %s1421_s29, %s1415_s17 }
  0xa9   : > { %1063 = vmatpush3.bf16.msra.mxu0 %v1062_v11  ;;  %1087 = vmatpush3.bf16.msra.mxu1 %v1062_v11  ;;  %v311_v36 = vmul.f32 4.0, %v306_v34  ;;  %v1109_v11 = vpack.c.bf16 %v505_v8, %v503_v7  ;;  %v516_v25 = vld [vmem:[#allocation7 + $0x88] sm:$0xff]  ;;  %v517_v30 = vld [vmem:[#allocation7 + $0x90] sm:$0xff]  ;;  %v522_v33 = vld [vmem:[#allocation7 + $0xb8] sm:$0xff] }
  0xaa   : > { %1064 = vmatprep.subr.bf16.mxu0 %v1500_v0  ;;  %1088 = vmatprep.subr.bf16.mxu1 %v1500_v0  ;;  %v520_v32 = vld [vmem:[#allocation7 + $0xa8] sm:$0xff]  ;;  %v519_v35 = vld [vmem:[#allocation7 + $0xa0] sm:$0xff]  ;;  %v525_v42 = vld [vmem:[#allocation7 + $0xd0] sm:$0xff]  ;;  %p1424_p4 = por %p1423_p7, %p1422_p5 }
  0xab   : > { %v312_v38 = vsub.f32 %v301_v29, %v311_v36  ;;  %v515_v29 = vld [vmem:[#allocation7 + $0x80] sm:$0xff]  ;;  %v1123_v34 = vpack.c.bf16 %v522_v33, %v520_v32  ;;  %v521_v36 = vld [vmem:[#allocation7 + $0xb0] sm:$0xff]  ;;  %v530_v44 = vld [vmem:[#allocation7 + $0xf8] sm:$0xff] }
  0xac   : > { %v1121_v31 = vpack.c.bf16 %v517_v30, %v515_v29  ;;  %v1125_v37 = vpack.c.bf16 %v521_v36, %v519_v35  ;;  %v527_v47 = vld [vmem:[#allocation7 + $0xe0] sm:$0xff]  ;;  %v687_v61 = vld [vmem:[#allocation8 + $0x90] sm:$0xff]  ;;  %v672_v3 = vld [vmem:[#allocation8 + $0x18] sm:$0xff]  ;;  %p1425_p1 = pnand %p1424_p4, %p1418_p12 }
  0xad   : > { %1066 = vmatpush3.bf16.msra.mxu0 %v1065_v14  ;;  %1090 = vmatpush3.bf16.msra.mxu1 %v1065_v14  ;;  %v313_v40 = vmul.f32 4.0, %v312_v38  ;;  %v512_v14 = vld [vmem:[#allocation7 + $0x68] sm:$0xff]  ;;  %v673_v8 = vld [vmem:[#allocation8 + $0x20] sm:$0xff]  ;;  %v699_v35 = vld [vmem:[#allocation8 + $0xf0] sm:$0xff] }
  0xae   : > { %1067 = vmatprep.subr.bf16.mxu0 %v1500_v0  ;;  %1091 = vmatprep.subr.bf16.mxu1 %v1500_v0  ;;  %v524_v38 = vld [vmem:[#allocation7 + $0xc8] sm:$0xff]  ;;  %v697_v29 = vld [vmem:[#allocation8 + $0xe0] sm:$0xff]  ;;  %v700_v36 = vld [vmem:[#allocation8 + $0xf8] sm:$0xff] }
  0xaf   : > { %v314_v41 = vadd.f32 %v313_v40, %v310_v39  ;;  %v526_v39 = vld [vmem:[#allocation7 + $0xd8] sm:$0xff]  ;;  %v523_v40 = vld [vmem:[#allocation7 + $0xc0] sm:$0xff]  ;;  %v674_v9 = vld [vmem:[#allocation8 + $0x28] sm:$0xff] }
  0xb0   : > { %v1145_v10 = vpack.c.bf16 %v674_v9, %v673_v8  ;;  %v698_v30 = vld [vmem:[#allocation8 + $0xe8] sm:$0xff]  ;;  %v681_v32 = vld [vmem:[#allocation8 + $0x60] sm:$0xff] }
  0xb1   : > { %1069 = vmatpush3.bf16.msra.mxu0 %v1068_v17  ;;  %1093 = vmatpush3.bf16.msra.mxu1 %v1068_v17  ;;  %vm316_vm2 = vcmp.le.f32.partialorder %v314_v41, 14.5  ;;  %vm315_vm4 = vcmp.ge.f32.partialorder %v314_v41, 0.5  ;;  %v1115_v17 = vpack.c.bf16 %v514_v15, %v512_v14  ;;  %v1127_v41 = vpack.c.bf16 %v526_v39, %v524_v38  ;;  %v676_v14 = vld [vmem:[#allocation8 + $0x38] sm:$0xff]  ;;  %v682_v33 = vld [vmem:[#allocation8 + $0x68] sm:$0xff]  ;;  %v683_v38 = vld [vmem:[#allocation8 + $0x70] sm:$0xff] }
  0xb2   : > { %1070 = vmatprep.subr.bf16.mxu0 %v1500_v0  ;;  %1094 = vmatprep.subr.bf16.mxu1 %v1500_v0  ;;  %v684_v39 = vld [vmem:[#allocation8 + $0x78] sm:$0xff] }
  0xb5   : > { %1072 = vmatpush3.bf16.msra.mxu0 %v1071_v20  ;;  %1096 = vmatpush3.bf16.msra.mxu1 %v1071_v20  ;;  %v1117_v20 = vpack.c.bf16 %v513_v19, %v511_v18  ;;  %v677_v19 = vld [vmem:[#allocation8 + $0x40] sm:$0xff] }
  0xb6   : > { %1073 = vmatprep.subr.bf16.mxu0 %v1500_v0  ;;  %1097 = vmatprep.subr.bf16.mxu1 %v1500_v0 }
  0xb9   : > { %1075 = vmatpush3.bf16.msra.mxu0 %v1074_v23  ;;  %1099 = vmatpush3.bf16.msra.mxu1 %v1074_v23 }
  0xba   : > { %1076 = vmatprep.subr.bf16.mxu0 %v1500_v0  ;;  %1100 = vmatprep.subr.bf16.mxu1 %v1500_v0  ;;  %v501_v0 = vld [vmem:[#allocation7 + $0x10] sm:$0xff] }
  0xbb   : > { %v1105_v5 = vpack.c.bf16 %v501_v0, %v499_v62  ;;  %v688_v62 = vld [vmem:[#allocation8 + $0x98] sm:$0xff]  ;;  %v671_v0 = vld [vmem:[#allocation8 + $0x10] sm:$0xff] }
  0xbc   : > { %v1141_v4 = vpack.c.bf16 %v672_v3, %v671_v0 }
  0xbd   : > { %1078 = vmatpush3.bf16.msra.mxu0 %v1077_v26  ;;  %1102 = vmatpush3.bf16.msra.mxu1 %v1077_v26  ;;  %v518_v26 = vld [vmem:[#allocation7 + $0x98] sm:$0xff] }
  0xbe   : > { %1104 = vmatprep.subr.bf16.mxu0 %v1103_v63  ;;  %v1119_v27 = vpack.c.bf16 %v518_v26, %v516_v25  ;;  %v1139_v63 = vpack.c.bf16 %v688_v62, %v687_v61  ;;  %v679_v25 = vld [vmem:[#allocation8 + $0x50] sm:$0xff]  ;;  %v680_v26 = vld [vmem:[#allocation8 + $0x58] sm:$0xff] }
 0x112   : > { %v324_v43 = vpop.permute.xlu0 %323 }
 0x113   : > { %v325_v45 = vrot.slane %v324_v43, 1 }
 0x115   : > { %v327_v48 = vsel %vm326_vm1, %v325_v45, %v324_v43  ;;  %v528_v43 = vld [vmem:[#allocation7 + $0xe8] sm:$0xff]  ;;  %v1129_v45 = vpack.c.bf16 %v525_v42, %v523_v40  ;;  %v1165_v40 = vpack.c.bf16 %v684_v39, %v683_v38  ;;  %v532_v42 = vld [vmem:[#allocation5 + $0x4] ss:$8 sm:$0x3]  ;;  %v701_v38 = vld [vmem:[#allocation5 + $0x5] ss:$0 sm:$0xff] }
 0x116   : > { %v328_v49 = vsel %vm316_vm2, %v327_v48, 0.0  ;;  %v332_v50 = vpop.permute.xlu0 %331  ;;  %v529_v48 = vld [vmem:[#allocation7 + $0xf0] sm:$0xff] }
 0x117   : > { %v329_v52 = vmul.f32 %v328_v49, %v319_v46  ;;  %v333_v53 = vrot.slane %v332_v50, 7  ;;  %v1131_v46 = vpack.c.bf16 %v530_v44, %v528_v43  ;;  %v1133_v49 = vpack.c.bf16 %v529_v48, %v527_v47 }
 0x118   : > { %v540_v43 = vsub.s32 1, %v1775_v28 }
 0x119   : > { %v335_v55 = vsel %vm334_vm3, %v333_v53, %v332_v50  ;;  %v330_v57 = vadd.f32 %v329_v52, %v322_v51 }
 0x11a   : > { %v336_v56 = vsel %vm315_vm4, %v335_v55, 0.0  ;;  %v685_v55 = vld [vmem:[#allocation8 + $0x80] sm:$0xff] }
 0x11b   : > { %v337_v58 = vmul.f32 %v336_v56, %v317_v54  ;;  %v686_v56 = vld [vmem:[#allocation8 + $0x88] sm:$0xff] }
 0x11d   : > { %v338_v59 = vadd.f32 %v337_v58, %v330_v57  ;;  %v1135_v57 = vpack.c.bf16 %v686_v56, %v685_v55  ;;  %v669_v58 = vld [vmem:[#allocation8] sm:$0xff] }
 0x11f   : > { %1018 = vmatmul.mubr.f32.vlgmr.msra.gmra.mrb[0].mxu0 %v338_v59  ;;  %1136 = vmatprep.subr.bf16.mxu1 %v1135_v57 }
 0x120   : > { %608 = vmatprep.mubr.f32.mxu0 %v1502_v1  ;;  %1106 = vmatpush1.bf16.msra.mxu0 %v1105_v5  ;;  %v509_v1 = vld [vmem:[#allocation7 + $0x50] sm:$0xff]  ;;  %v689_v5 = vld [vmem:[#allocation8 + $0xa0] sm:$0xff] }
 0x121   : > { %1108 = vmatprep.subr.bf16.mxu0 %v1107_v6  ;;  %v1113_v16 = vpack.c.bf16 %v509_v1, %v507_v13  ;;  %v690_v6 = vld [vmem:[#allocation8 + $0xa8] sm:$0xff]  ;;  %v675_v1 = vld [vmem:[#allocation8 + $0x30] sm:$0xff] }
 0x122   : > { %v1143_v7 = vpack.c.bf16 %v690_v6, %v689_v5  ;;  %v1149_v15 = vpack.c.bf16 %v676_v14, %v675_v1 }
 0x124   : > { %1110 = vmatpush1.bf16.msra.mxu0 %v1109_v11  ;;  %v691_v11 = vld [vmem:[#allocation8 + $0xb0] sm:$0xff] }
 0x125   : > { %1112 = vmatprep.subr.bf16.mxu0 %v1111_v12  ;;  %v692_v12 = vld [vmem:[#allocation8 + $0xb8] sm:$0xff] }
 0x126   : > { %v1147_v13 = vpack.c.bf16 %v692_v12, %v691_v11 }
 0x128   : > { %1114 = vmatpush1.bf16.msra.mxu0 %v1113_v16  ;;  %v693_v16 = vld [vmem:[#allocation8 + $0xc0] sm:$0xff] }
 0x129   : > { %1116 = vmatprep.subr.bf16.mxu0 %v1115_v17  ;;  %v694_v17 = vld [vmem:[#allocation8 + $0xc8] sm:$0xff] }
 0x12a   : > { %v1151_v18 = vpack.c.bf16 %v694_v17, %v693_v16 }
 0x12c   : > { %1118 = vmatpush1.bf16.msra.mxu0 %v1117_v20  ;;  %v678_v20 = vld [vmem:[#allocation8 + $0x48] sm:$0xff] }
 0x12d   : > { %1120 = vmatprep.subr.bf16.mxu0 %v1119_v27  ;;  %v1157_v27 = vpack.c.bf16 %v680_v26, %v679_v25 }
 0x130   : > { %1122 = vmatpush1.bf16.msra.mxu0 %v1121_v31  ;;  %v1159_v31 = vpack.c.bf16 %v698_v30, %v697_v29 }
 0x131   : > { %1124 = vmatprep.subr.bf16.mxu0 %v1123_v34  ;;  %v1161_v34 = vpack.c.bf16 %v682_v33, %v681_v32 }
 0x134   : > { %1126 = vmatpush1.bf16.msra.mxu0 %v1125_v37  ;;  %v1163_v37 = vpack.c.bf16 %v700_v36, %v699_v35 }
 0x135   : > { %1128 = vmatprep.subr.bf16.mxu0 %v1127_v41  ;;  %v536_v41 = vsub.s32 0, %v1775_v28 }
 0x137   : > { %v537_v44 = vrot.slane %v532_v42, %v536_v41 }
 0x138   : > { %1130 = vmatpush1.bf16.msra.mxu0 %v1129_v45  ;;  %v541_v45 = vrot.slane %v532_v42, %v540_v43 }
 0x139   : > { %1132 = vmatprep.subr.bf16.mxu0 %v1131_v46 }
 0x13c   : > { %1134 = vmatpush1.bf16.msra.mxu0 %v1133_v49 }
 0x1f2   : > { %v421_v21 = vpop.f32.mrb[0].mxu0 }
 0x1f3   : > { %v425_v22 = vsub.f32 %v338_v59, %v421_v21  ;;  %v1019_v23 = vpop.f32.mrb[1].mxu0  ;;  %v670_v59 = vld [vmem:[#allocation8 + $0x8] sm:$0xff]  ;;  %v1153_v21 = vpack.c.bf16 %v678_v20, %v677_v19 }
 0x1f4   : > { %v1137_v60 = vpack.c.bf16 %v670_v59, %v669_v58  ;;  %v696_v23 = vld [vmem:[#allocation8 + $0xd8] sm:$0xff] }
 0x1f5   : > { %v426_v24 = vmul.f32 %v425_v22, %v425_v22 }
 0x1f7   : > { %1053 = vmatmul.mubr.f32.vlgmr.msra.gmra.mrb[0].mxu1 %v426_v24 }
 0x1f8   : > { %1138 = vmatpush3.bf16.msra.mxu1 %v1137_v60 }
 0x1f9   : > { %1140 = vmatprep.subr.bf16.mxu1 %v1139_v63 }
 0x1fc   : > { %1142 = vmatpush3.bf16.msra.mxu1 %v1141_v4 }
 0x1fd   : > { %1144 = vmatprep.subr.bf16.mxu1 %v1143_v7 }
 0x200   : > { %1146 = vmatpush3.bf16.msra.mxu1 %v1145_v10 }
 0x201   : > { %1148 = vmatprep.subr.bf16.mxu1 %v1147_v13 }
 0x204   : > { %1150 = vmatpush3.bf16.msra.mxu1 %v1149_v15 }
 0x205   : > { %1152 = vmatprep.subr.bf16.mxu1 %v1151_v18 }
 0x208   : > { %1154 = vmatpush3.bf16.msra.mxu1 %v1153_v21 }
 0x2ca   : > { %v493_v50 = vpop.f32.mrb[0].mxu1 }
 0x2cb   : > { %v494_v51 = vadd.f32 1e-05, %v493_v50  ;;  %v1054_v52 = vpop.f32.mrb[1].mxu1 }
 0x2cd   : > { %1263 = vrsqrt.f32 %v494_v51 }
 0x2d7   : > { %v1264_v53 = vpop.eup %1263 }
 0x2d8   : > { %v498_v54 = vmul.f32 %v1264_v53, %v425_v22  ;;  %v695_v22 = vld [vmem:[#allocation8 + $0xd0] sm:$0xff] }
 0x2d9   : > { %v1155_v24 = vpack.c.bf16 %v696_v23, %v695_v22 }
 0x2da   : > { %609 = vmatmul.mubr.f32.vlgmr.msra.gmra.mrb[2].mxu0 %v498_v54 }
 0x2db   : > { %1156 = vmatprep.subr.bf16.mxu1 %v1155_v24 }
 0x2dc   : > { %1158 = vmatpush3.bf16.msra.mxu1 %v1157_v27 }
 0x2dd   : > { %1160 = vmatprep.subr.bf16.mxu1 %v1159_v31 }
 0x2e0   : > { %1162 = vmatpush3.bf16.msra.mxu1 %v1161_v34 }
 0x2e1   : > { %1164 = vmatprep.subr.bf16.mxu1 %v1163_v37 }
 0x2e4   : > { %1166 = vmatpush3.bf16.msra.mxu1 %v1165_v40 }
 0x3ad   : > { %v610_v46 = vpop.f32.mrb[2].mxu0 }
 0x3ae   : > { %v611_v47 = vadd.f32 %v610_v46, %v537_v44  ;;  %v612_v48 = vpop.f32.mrb[3].mxu0 }
 0x3af   : > { %v613_v49 = vadd.f32 %v612_v48, %v541_v45 }
 0x3b0   : > { %v617_v50 = vmul.f32 0.70710677, %v611_v47  ;;  %v615_v34 = vmul.f32 0.5, %v611_v47 }
 0x3b1   : > { %v618_v51 = vmul.f32 0.70710677, %v613_v49  ;;  %v616_v32 = vmul.f32 0.5, %v613_v49 }
 0x3b2   : > { %v619_v52 = vand.u32 2147483647, %v617_v50  ;;  %vm659_vm5 = vcmp.lt.f32.partialorder %v617_v50, 0.0 }
 0x3b3   : > { %v620_v53 = vand.u32 2147483647, %v618_v51  ;;  %vm660_vm6 = vcmp.lt.f32.partialorder %v618_v51, 0.0 }
 0x3b4   : > { %v621_v54 = vmul.f32 0.3275911, %v619_v52  ;;  %v647_v58 = vsub.f32 0.0, %v619_v52 }
 0x3b5   : > { %v622_v55 = vmul.f32 0.3275911, %v620_v53  ;;  %v648_v59 = vsub.f32 0.0, %v620_v53 }
 0x3b6   : > { %v623_v56 = vadd.f32 1.0, %v621_v54  ;;  %v649_v28 = vmul.f32 %v647_v58, %v619_v52 }
 0x3b7   : > { %v624_v57 = vadd.f32 1.0, %v622_v55  ;;  %v650_v63 = vmul.f32 %v648_v59, %v620_v53 }
 0x3b8   : > { %1265 = vrcp.f32 %v623_v56  ;;  %v651_v4 = vmul.f32 1.442695, %v649_v28 }
 0x3b9   : > { %1267 = vrcp.f32 %v624_v57  ;;  %v653_v7 = vmul.f32 1.442695, %v650_v63 }
 0x3ba   : > { %1269 = vpow2.f32 %v651_v4 }
 0x3bb   : > { %1271 = vpow2.f32 %v653_v7 }
 0x3c2   : > { %v1266_v60 = vpop.eup %1265 }
 0x3c3   : > { %v1268_v61 = vpop.eup %1267  ;;  %v629_v62 = vmul.f32 1.0614054, %v1266_v60 }
 0x3c4   : > { %v630_v0 = vmul.f32 1.0614054, %v1268_v61  ;;  %v1270_v19 = vpop.eup %1269 }
 0x3c5   : > { %v631_v3 = vadd.f32 -1.4531521, %v629_v62  ;;  %v1272_v21 = vpop.eup %1271 }
 0x3c6   : > { %v632_v5 = vadd.f32 -1.4531521, %v630_v0 }
 0x3c7   : > { %v633_v6 = vmul.f32 %v1266_v60, %v631_v3 }
 0x3c8   : > { %v634_v8 = vmul.f32 %v1268_v61, %v632_v5 }
 0x3c9   : > { %v635_v9 = vadd.f32 1.4214138, %v633_v6 }
 0x3ca   : > { %v636_v10 = vadd.f32 1.4214138, %v634_v8 }
 0x3cb   : > { %v637_v11 = vmul.f32 %v1266_v60, %v635_v9 }
 0x3cc   : > { %v638_v12 = vmul.f32 %v1268_v61, %v636_v10 }
 0x3cd   : > { %v639_v13 = vadd.f32 -0.28449672, %v637_v11 }
 0x3ce   : > { %v640_v1 = vadd.f32 -0.28449672, %v638_v12 }
 0x3cf   : > { %v641_v14 = vmul.f32 %v1266_v60, %v639_v13 }
 0x3d0   : > { %v642_v15 = vmul.f32 %v1268_v61, %v640_v1 }
 0x3d1   : > { %v643_v16 = vadd.f32 0.2548296, %v641_v14 }
 0x3d2   : > { %v644_v17 = vadd.f32 0.2548296, %v642_v15 }
 0x3d3   : > { %v645_v18 = vmul.f32 %v1266_v60, %v643_v16 }
 0x3d4   : > { %v646_v20 = vmul.f32 %v1268_v61, %v644_v17 }
 0x3d5   : > { %v655_v22 = vmul.f32 %v1270_v19, %v645_v18 }
 0x3d6   : > { %v656_v23 = vmul.f32 %v1272_v21, %v646_v20 }
 0x3d7   : > { %v657_v24 = vsub.f32 1.0, %v655_v22 }
 0x3d8   : > { %v658_v25 = vsub.f32 1.0, %v656_v23 }
 0x3d9   : > { %v661_v26 = vsub.f32 0.0, %v657_v24 }
 0x3da   : > { %v662_v27 = vsub.f32 0.0, %v658_v25 }
 0x3db   : > { %v663_v29 = vsel %vm659_vm5, %v661_v26, %v657_v24 }
 0x3dc   : > { %v665_v30 = vadd.f32 1.0, %v663_v29  ;;  %v664_v31 = vsel %vm660_vm6, %v662_v27, %v658_v25 }
 0x3dd   : > { %v666_v33 = vadd.f32 1.0, %v664_v31 }
 0x3de   : > { %v667_v36 = vmul.f32 %v665_v30, %v615_v34 }
 0x3df   : > { %v668_v35 = vmul.f32 %v666_v33, %v616_v32 }
 0x3e1   : > { %766 = vmatprep.mubr.f32.mxu1 %v668_v35 }
 0x3e2   : > { %767 = vmatmul.mubr.f32.vlgmr.msra.gmra.mrb[2].mxu1 %v667_v36 }
 0x4b5   : > { %v982_v37 = vpop.f32.mrb[2].mxu1 }
 0x4b6   : > { %v983_v39 = vpop.f32.mrb[3].mxu1 }
 0x4b7   : > { %v984_v40 = vadd.f32 %v983_v39, %v982_v37 }
 0x4b9   : > { %v769_v41 = vadd.f32 %v984_v40, %v701_v38 }
 0x4bb   : > { %v772_v42 = vadd.f32 %v769_v41, %v1771_v2 }
 0x4bd   : > { %773 = vst [vmem:[%s295_s30] sm:$0xff] %v772_v42 }
 0x4be   : > { %1428 = shalt.err (!%p1425_p1)
}
 0x4bf   : > { %s1429_s28 = scalar_lea.hbm %s1789_s16, 128  ;;  %s1433_s15 = scalar_lea.hbm %s1838_s5, 256 }
 0x4c0   : > { %p1430_p3 = scmp.ne.s32.totalorder %s1789_s16, %s1429_s28  ;;  %p1434_p0 = scmp.lt.u32.totalorder %s1789_s16, %s1838_s5 }
 0x4c1   : > { %p1435_p2 = scmp.lt.u32.totalorder %s1433_s15, %s1429_s28  ;;  %p1437_p6 = scmp.lt.u32.totalorder %s1429_s28, %s1789_s16 }
 0x4c2   : > { %p1431_p9 = pnand %p1430_p3, %p1856_p10 }
 0x4c3   : > { %p1436_p8 = por %p1435_p2, %p1434_p0 }
 0x4c4   : > { %p1432_p13 = pneg %p1431_p9 }
 0x4c5   : > { %p1438_p11 = por %p1437_p6, %p1436_p8 }
 0x4c7   : > { %p1439_p12 = pnand %p1438_p11, %p1432_p13 }
 0x4c9   : > { %1442 = shalt.err (!%p1439_p12)
}
 0x4ca   : > { %1185 = dma.vmem_to_hbm [thread:$0]  (%p1856_p10), %s1791_s27, 128, %s1789_s16, %s775_s10  }
 0x4cb PF: > { %s800_s26 = sand.u32 1, %s1477_s18   ;;  %p1857_p5 = scmp.ne.s32.totalorder %s1849_s14, 0 }
 0x4cc   : > { %p1858_p7 = scmp.ge.s32.totalorder %s1489_s21, 2  ;;  %s801_s30 = scalar_lea.sflag [#allocation4], %s800_s26 }
 0x4ce   : > { %p1205_p4 = pnand %p1858_p7, %p1857_p5 }
 0x4d0   : > { %1472 = dma.done.wait (!%p1205_p4), %s801_s30, 128  }
 0x4d1   : > { %1474 = vsyncadd (!%p1205_p4), %s801_s30, 4294967168  ;;  %p20_p1 = scmp.ge.s32.totalorder %s1675_s11, 4   ;;  %s1859_s18 = smov %s1481_s19 }
 0x4d2   : > { %s1860_s19 = smov %s1485_s20  ;;  %s1861_s20 = smov %s1686_s23 }
 0x4d3   : > { %s1862_s21 = smov %s1675_s11  ;;  %22 = sbr.rel (!%p20_p1) target bundleno = 7 (0x7), region = 102 }
 0x4da   :  { %806 = vsyncpa [#allocation3], 1 }
 0x4db   :  { %808 = vsyncpa [#allocation3 + $0x1], 1 }
 0x4dc   :  { %809 = vsyncpa [#allocation6], 1 }
 0x4dd   :  { %810 = vsyncpa [#allocation9], 1 }
 0x4de   :  { %811 = vsyncpa [#allocation4], 1 }
 0x4df   :  { %813 = vsyncpa [#allocation4 + $0x1], 1 }

</bundles_post_ra>
